<compile_context>
chip_gen: v7x
topology: tpu7x:2x2x1
jax: 0.10.0
libtpu: 0.0.40
codegen_flags: <defaults>
</compile_context>

<pallas_src>
from functools import lru_cache

import numpy as np
import jax
import jax.numpy as jnp
from jax.experimental import pallas as pl
from jax.experimental.pallas import tpu as pltpu


def _floor_to(x: int, m: int) -> int:
    return (x // m) * m


def _ceil_to(x: int, m: int) -> int:
    return -(-x // m) * m


def _choose_tile_rows(r: int, w: int, out_w: int, itemsize: int,
                      target_in_bytes: int = 6 << 20,
                      vmem_budget_bytes: int = 24 << 20,
                      min_steps: int = 8) -> int:
    """Rows per grid step: ~6 MiB input tiles, 32-row aligned, >= min_steps
    grid steps when possible, even step count preferred, and the
    double-buffered (in + out) working set kept under ~24 MiB (v7x-safe)."""
    in_row = w * itemsize
    out_row = out_w * itemsize
    if r <= 32:
        return r                                   # tiny input: one full block
    rows = max(32, target_in_bytes // max(1, in_row))
    cap = vmem_budget_bytes // (2 * (in_row + out_row))   # 2x double-buffered
    rows = min(rows, max(32, cap))
    rows = min(rows, max(32, r // min_steps))      # keep the pipeline deep
    rows = max(32, _floor_to(rows, 32))            # sublane packing for all dtypes
    rows = min(rows, r)
    steps = pl.cdiv(r, rows)
    if steps > 1 and steps % 2 == 1:               # even steps -> no idle TC on v7x
        alt = min(rows, max(32, _ceil_to(pl.cdiv(r, steps + 1), 32)))
        if pl.cdiv(r, alt) % 2 == 0:
            rows = alt
    return rows


_COMPILER_PARAMS = pltpu.CompilerParams(
    dimension_semantics=("parallel",),
    vmem_limit_bytes=48 << 20,
)


@lru_cache(maxsize=None)
def _build_dynamic_crop_call(r: int, w: int, out_w: int, tile_r: int,
                             dtype: np.dtype):
    """Crop kernel with `left` as a scalar-prefetch operand (no recompile when
    only the random draw changes)."""

    def _kernel(left_ref, x_ref, o_ref):
        left = left_ref[0]
        # Dynamic lane-window copy; the shift work runs on the XLU and is
        # hidden under the HBM-bound tile copy.
        o_ref[...] = x_ref[:, pl.ds(left, out_w)]

    steps = pl.cdiv(r, tile_r)
    return pl.pallas_call(
        _kernel,
        out_shape=jax.ShapeDtypeStruct((r, out_w), dtype),
        grid_spec=pltpu.PrefetchScalarGridSpec(
            num_scalar_prefetch=1,
            grid=(steps,),
            in_specs=[pl.BlockSpec((tile_r, w), lambda i, left_ref: (i, 0))],
            out_specs=pl.BlockSpec((tile_r, out_w), lambda i, left_ref: (i, 0)),
        ),
        compiler_params=_COMPILER_PARAMS,
    )


@lru_cache(maxsize=None)
def _build_static_crop_call(r: int, w: int, left: int, out_w: int, tile_r: int,
                            dtype: np.dtype):
    """Known-good fallback: `left` baked in as a static window (recompiles per
    (left, out_w) draw)."""

    def _kernel(x_ref, o_ref):
        o_ref[...] = x_ref[:, left:left + out_w]

    steps = pl.cdiv(r, tile_r)
    return pl.pallas_call(
        _kernel,
        out_shape=jax.ShapeDtypeStruct((r, out_w), dtype),
        grid=(steps,),
        in_specs=[pl.BlockSpec((tile_r, w), lambda i: (i, 0))],
        out_specs=pl.BlockSpec((tile_r, out_w), lambda i: (i, 0)),
        compiler_params=_COMPILER_PARAMS,
    )


# Whether the dynamic-`left` kernel lowers / produces correct results on this
# toolchain; validated once, then trusted.
_DYN = {"supported": True, "validated": False}


def _crop(image: jax.Array, left: int, out_w: int) -> jax.Array:
    n, c, h, w = image.shape
    r = n * c * h
    x2 = image.reshape(r, w)                       # free reshape of major dims
    dtype = np.dtype(image.dtype)
    tile_r = _choose_tile_rows(r, w, out_w, dtype.itemsize)

    if _DYN["supported"]:
        try:
            call = _build_dynamic_crop_call(r, w, out_w, tile_r, dtype)
            out2 = call(jnp.asarray([left], dtype=jnp.int32), x2)
            if not _DYN["validated"]:
                # One-time numeric check of the dynamic lane-slice lowering.
                ref2 = jax.lax.slice_in_dim(x2, left, left + out_w, axis=1)
                if not bool(jnp.array_equal(out2, ref2)):
                    raise RuntimeError("dynamic-left crop produced wrong data")
                _DYN["validated"] = True
            return out2.reshape(n, c, h, out_w)
        except Exception:
            # Dynamic minor-dim slice not supported here: degrade to the
            # proven static-window kernel (costs one compile per draw).
            _DYN["supported"] = False

    call = _build_static_crop_call(r, w, left, out_w, tile_r, dtype)
    return call(x2).reshape(n, c, h, out_w)


def random_horizontal_crop(image: jax.Array,
                           max_indent,
                           rng: np.random.RandomState) -> jax.Array:
    """image: (N, C, H, W). Host-side RNG draw (like the reference module)."""
    n, c, h, w = image.shape

    if isinstance(max_indent, float) and max_indent > 1.0:
        raise ValueError("float bigger than 1")

    max_indent_i = (int(w * max_indent) if max_indent < 1 else int(max_indent)) + 1
    if max_indent_i <= 1:
        return image

    left = int(rng.randint(max_indent_i))
    right = int(rng.randint(max_indent_i))
    if not (w > left + right):
        return image

    out_w = w - left - right
    if out_w == w:                                  # identity crop
        return image
    return _crop(image, left, out_w)


if __name__ == "__main__":
    key = jax.random.PRNGKey(0)
    N, C, H, W = 2, 4, 16, 16
    image = jax.random.uniform(key, (N, C, H, W), dtype=jnp.float32)

    # Random path (host-side draw, exactly like the reference module).
    rng = np.random.RandomState(0)
    max_indent = 0.25                               # -> max_indent_i = 5
    out = random_horizontal_crop(image, max_indent, rng)
    out = jax.block_until_ready(out)

    # Re-derive the same draw and compare against a plain-JAX crop.
    rng_ref = np.random.RandomState(0)
    max_i = int(W * max_indent) + 1
    left = int(rng_ref.randint(max_i))
    right = int(rng_ref.randint(max_i))
    if max_i > 1 and W > left + right:
        ref = image[:, :, :, left:W - right] if (left + right) > 0 else image
    else:
        ref = image
    assert out.shape == ref.shape, (out.shape, ref.shape)
    np.testing.assert_array_equal(np.asarray(out), np.asarray(ref))

    # Forced non-trivial crop so the Pallas kernel is exercised even if the
    # random draw happened to be a no-op.
    forced = _crop(image, 2, W - 2 - 1)             # left=2, right=1 -> out_w=13
    forced = jax.block_until_ready(forced)
    np.testing.assert_array_equal(np.asarray(forced),
                                  np.asarray(image[:, :, :, 2:W - 1]))

    print("KERNEL_OK")
</pallas_src>

<mosaic_0001>
module attributes {stable_mosaic.version = 11 : i64} {
  func.func @_kernel(%arg0: i32, %arg1: memref<1xi32, #tpu.memory_space<smem>>, %arg2: memref<32x16xf32, #tpu.memory_space<vmem>>, %arg3: memref<32x12xf32, #tpu.memory_space<vmem>>) attributes {dimension_semantics = [#tpu.dimension_semantics<parallel>], iteration_bounds = array<i64: 4>, scalar_prefetch = 1 : i64, scratch_operands = 0 : i64, tpu.core_type = #tpu.core_type<tc>, window_params = [{transform_indices = @transform_0, window_bounds = array<i64: 32, 16>}, {transform_indices = @transform_1, window_bounds = array<i64: 32, 12>}]} {
    %c0 = arith.constant 0 : index
    %0 = memref.load %arg1[%c0] : memref<1xi32, #tpu.memory_space<smem>>
    %c0_0 = arith.constant 0 : index
    %1 = arith.index_cast %0 : i32 to index
    %2 = vector.load %arg2[%c0_0, %1] : memref<32x16xf32, #tpu.memory_space<vmem>>, vector<32x12xf32>
    %c0_1 = arith.constant 0 : index
    %c0_2 = arith.constant 0 : index
    %3 = vector.load %arg3[%c0_1, %c0_2] : memref<32x12xf32, #tpu.memory_space<vmem>>, vector<32x12xf32>
    tpu.vector_store %arg3[%c0_1, %c0_2], %2 {strides = array<i32>} : memref<32x12xf32, #tpu.memory_space<vmem>>, vector<32x12xf32>,
    return
  }
  func.func @transform_0(%arg0: i32, %arg1: memref<1xi32, #tpu.memory_space<smem>>) -> (i32, i32) {
    %c0_i32 = arith.constant 0 : i32
    %c0_i32_0 = arith.constant 0 : i32
    return %arg0, %c0_i32 : i32, i32
  }
  func.func @transform_1(%arg0: i32, %arg1: memref<1xi32, #tpu.memory_space<smem>>) -> (i32, i32) {
    %c0_i32 = arith.constant 0 : i32
    %c0_i32_0 = arith.constant 0 : i32
    return %arg0, %c0_i32 : i32, i32
  }
}

module attributes {stable_mosaic.version = 11 : i64} {
  func.func @_kernel(%arg0: i32, %arg1: memref<32x16xf32, #tpu.memory_space<vmem>>, %arg2: memref<32x12xf32, #tpu.memory_space<vmem>>) attributes {dimension_semantics = [#tpu.dimension_semantics<parallel>], iteration_bounds = array<i64: 4>, scalar_prefetch = 0 : i64, scratch_operands = 0 : i64, tpu.core_type = #tpu.core_type<tc>, window_params = [{transform_indices = @transform_0, window_bounds = array<i64: 32, 16>}, {transform_indices = @transform_1, window_bounds = array<i64: 32, 12>}]} {
    %c0 = arith.constant 0 : index
    %c4 = arith.constant 4 : index
    %0 = vector.load %arg1[%c0, %c4] : memref<32x16xf32, #tpu.memory_space<vmem>>, vector<32x12xf32>
    %c0_0 = arith.constant 0 : index
    %c0_1 = arith.constant 0 : index
    %1 = vector.load %arg2[%c0_0, %c0_1] : memref<32x12xf32, #tpu.memory_space<vmem>>, vector<32x12xf32>
    tpu.vector_store %arg2[%c0_0, %c0_1], %0 {strides = array<i32>} : memref<32x12xf32, #tpu.memory_space<vmem>>, vector<32x12xf32>,
    return
  }
  func.func @transform_0(%arg0: i32) -> (i32, i32) {
    %c0_i32 = arith.constant 0 : i32
    %c0_i32_0 = arith.constant 0 : i32
    return %arg0, %c0_i32 : i32, i32
  }
  func.func @transform_1(%arg0: i32) -> (i32, i32) {
    %c0_i32 = arith.constant 0 : i32
    %c0_i32_0 = arith.constant 0 : i32
    return %arg0, %c0_i32 : i32, i32
  }
}

</mosaic_0001>

<bundles_post_ra>
// kernel: tpu_custom_call.1
= control target key start
LH: loop header
LB: loop body
LE: loop exit
PB: predicated region body
PF: predicated region fallthrough
CT: control target
= control target key end

     0   :  { %s240_s6 = smov 0   ;;  %s257_s0 = inlined_call_operand.vmem [shape: f32[128,16], index: 0, kind: input, shape index: {}]   ;;  %s258_s1 = inlined_call_operand.vmem [shape: f32[128,12], index: 1, kind: output, shape index: {}]  }
   0x1 LB: > { %s201_s7 = sadd.s32 4294967295, %s227_s6   ;;  %p205_p0 = scmp.ge.s32.totalorder %s227_s6, 1  ;;  %s227_s6 = sphi %s240_s6, %s11_s6  }
   0x2   : > { %p88_p1 = scmp.lt.s32.totalorder %s227_s6, 5 }
   0x4   : > { %p89_p2 = pnand %p205_p0, %p88_p1 }
   0x5   : > { %s206_s8 = sshll.u32 (!%p89_p2), %s201_s7, 2  ;;  %s229_s13 = smov (!%p89_p2), 124   ;;  %vm140_vm0 = vcmask (!%p89_p2), 97280  }
   0x6   : > { %92 = sbr.rel (%p89_p2) target bundleno = 137 (0x89), region = 24  ;;  %p109_p3 = scmp.lt.s32.totalorder (!%p89_p2), %s206_s8, 15 }
   0xd   : > { %s260_s8 = smov (!%p109_p3, %s206_s8), 15 }
   0xe   : > { %s207_s9 = sshll.u32 %s260_s8, 3 }
   0xf   : > { %s112_s12 = scalar_lea.vmem %s257_s0, %s207_s9  ;;  %s118_s16 = scalar_lea.vmem %s258_s1, %s207_s9 }
  0x10   : > { %v122_v0 = vld [vmem:[%s112_s12 + $0x10] sm:$0xff]  ;;  %v120_v1 = vld [vmem:[%s112_s12] sm:$0xff]  ;;  %v123_v2 = vld [vmem:[%s112_s12 + $0x18] sm:$0xff] }
  0x11   : > { %132 = vrot.lane.b32.xlu1 %v122_v0, %s229_s13  ;;  %128 = vrot.lane.b32.xlu0 %v120_v1, %s229_s13  ;;  %v121_v3 = vld [vmem:[%s112_s12 + $0x8] sm:$0xff] }
  0x15   : > { %134 = vrot.lane.b32.xlu1 %v123_v2, %s229_s13  ;;  %130 = vrot.lane.b32.xlu0 %v121_v3, %s229_s13 }
  0x83   : > { %v133_v4 = vpop.permute.xlu1 %132  ;;  %v129_v5 = vpop.permute.xlu0 %128 }
  0x84   : > { %143 = vst.msk [vmem:[%s118_s16 + $0x10] sm:$0xff] %vm140_vm0, %v133_v4  ;;  %141 = vst.msk [vmem:[%s118_s16] sm:$0xff] %vm140_vm0, %v129_v5 }
  0x87   : > { %v135_v6 = vpop.permute.xlu1 %134  ;;  %v131_v7 = vpop.permute.xlu0 %130 }
  0x88   : > { %144 = vst.msk [vmem:[%s118_s16 + $0x18] sm:$0xff] %vm140_vm0, %v135_v6  ;;  %142 = vst.msk [vmem:[%s118_s16 + $0x8] sm:$0xff] %vm140_vm0, %v131_v7 }
  0x89 PF: > { %s11_s6 = sadd.s32 1, %s227_s6  }
  0x8a   : > { %p8_p4 = scmp.ge.s32.totalorder %s11_s6, 6  }
  0x8c   :  { %10 = sbr.rel (!%p8_p4) target bundleno = 1 (0x1), region = 54 }

</bundles_post_ra>
